<compile_context>
chip_gen: v7x
topology: tpu7x:2x2x1
jax: 0.10.0
libtpu: 0.0.40
codegen_flags: <defaults>
</compile_context>

<pallas_src>
import functools
import math

import jax
import jax.numpy as jnp
from jax.experimental import pallas as pl
from jax.experimental.pallas import tpu as pltpu


def _exact_gelu(x):
    # nn.GELU() default (approximate='none'): 0.5 * x * (1 + erf(x / sqrt(2)))
    return 0.5 * x * (1.0 + jax.lax.erf(x * (1.0 / math.sqrt(2.0))))


# ---------------------------------------------------------------------------
# Kernels
# ---------------------------------------------------------------------------


def _rdcab_fused_kernel(x_ref, w1_ref, w2_ref, bias_ref, wse1_ref, wse2_ref,
                        o_ref, *, bb, cr):
    """Whole-image path: one (bb, C, HW) block per grid step, fori_loop over images."""
    w1 = w1_ref[...]             # (C, C)   fc1 weight, (out, in)
    w2 = w2_ref[...]             # (C, C)   fc2 weight, (out, in)
    wse1 = wse1_ref[...]         # (Cr, C)  SE conv1 weight, (out, in)
    wse2 = wse2_ref[...]         # (C, Cr)  SE conv2 weight, (out, in)
    b1 = bias_ref[:, 0:1]        # (C, 1)
    b2 = bias_ref[:, 1:2]        # (C, 1)
    bse1 = bias_ref[0:cr, 2:3]   # (Cr, 1)
    bse2 = bias_ref[:, 3:4]      # (C, 1)

    def per_image(i, carry):
        x = x_ref[i]                                         # (C, HW)
        # layer_norm_process over channels (biased var, eps=1e-5, gamma=1, beta=0)
        mean = jnp.mean(x, axis=0, keepdims=True)
        centered = x - mean
        var = jnp.mean(centered * centered, axis=0, keepdims=True)
        y = centered / jnp.sqrt(var + 1e-5)
        # MlpBlock: fc1 -> exact GELU -> fc2 (dropout_rate = 0)
        h = jnp.dot(w1, y, preferred_element_type=jnp.float32) + b1
        h = _exact_gelu(h)
        h = jnp.dot(w2, h, preferred_element_type=jnp.float32) + b2
        # CALayer (a=0): mean over HW -> 1x1 conv -> ReLU -> 1x1 conv -> sigmoid -> scale
        pooled = jnp.mean(h, axis=1, keepdims=True)          # (C, 1)
        s = jnp.dot(wse1, pooled, preferred_element_type=jnp.float32) + bse1
        s = jnp.maximum(s, 0.0)
        s = jnp.dot(wse2, s, preferred_element_type=jnp.float32) + bse2
        s = jax.nn.sigmoid(s)
        # residual: re-read the resident input tile (short live range)
        o_ref[i] = x_ref[i] + h * s
        return carry

    # fori_loop bounds live ranges to one image's intermediates; unroll only if tiny.
    jax.lax.fori_loop(0, bb, per_image, 0, unroll=bb <= 2)


def _rdcab_pass1_kernel(x_ref, w1_ref, w2_ref, bias_ref, h_ref, pool_ref):
    """Tiled path, pass 1: LN + MLP on one (1, C, thw) tile; accumulate channel sums."""
    t = pl.program_id(1)

    x = x_ref[0]                                             # (C, thw)
    mean = jnp.mean(x, axis=0, keepdims=True)
    centered = x - mean
    var = jnp.mean(centered * centered, axis=0, keepdims=True)
    y = centered / jnp.sqrt(var + 1e-5)
    h = jnp.dot(w1_ref[...], y, preferred_element_type=jnp.float32) + bias_ref[:, 0:1]
    h = _exact_gelu(h)
    h = jnp.dot(w2_ref[...], h, preferred_element_type=jnp.float32) + bias_ref[:, 1:2]
    h_ref[0] = h

    # Per-image channel-sum accumulator: pool block index is constant over the HW axis,
    # so it stays resident; init at the first HW tile of each image.
    @pl.when(t == 0)
    def _():
        pool_ref[...] = jnp.zeros_like(pool_ref)

    pool_ref[0] += jnp.sum(h, axis=1, keepdims=True)


def _rdcab_pass2_kernel(x_ref, h_ref, pool_ref, wse1_ref, wse2_ref, bias_ref,
                        o_ref, s_ref, *, cr, inv_hw):
    """Tiled path, pass 2: SE squeeze/excite once per image, then scale + residual."""
    t = pl.program_id(1)

    @pl.when(t == 0)
    def _():
        pooled = pool_ref[0] * inv_hw                        # (C, 1)
        s = jnp.dot(wse1_ref[...], pooled,
                    preferred_element_type=jnp.float32) + bias_ref[0:cr, 2:3]
        s = jnp.maximum(s, 0.0)
        s = jnp.dot(wse2_ref[...], s,
                    preferred_element_type=jnp.float32) + bias_ref[:, 3:4]
        s_ref[...] = jax.nn.sigmoid(s)

    o_ref[0] = x_ref[0] + h_ref[0] * s_ref[...]


# ---------------------------------------------------------------------------
# Generation-aware sizing
# ---------------------------------------------------------------------------


def _tpu_vmem_and_cores():
    """(physical VMEM bytes per TensorCore, TensorCores per chip) from device_kind."""
    try:
        kind = jax.devices()[0].device_kind.lower()
    except Exception:
        kind = ""
    if "v7" in kind:
        return 64 << 20, 2            # v7x: 64 MiB / TC, 2 TCs
    if "v6" in kind or "v5e" in kind or "lite" in kind:
        return 128 << 20, 1           # v5e / v6e: 128 MiB, single TC
    if "v5" in kind or "v4" in kind:
        return 128 << 20, 2           # v4 / v5p megacore
    return 64 << 20, 2                # unknown: be conservative


def _fused_vmem_bytes(bb, C, HW, Cr):
    io = 2 * 2 * bb * C * HW * 4          # x in + out blocks, double-buffered
    inter = 5 * C * HW * 4                # fori_loop-bounded per-image temporaries
    wts = 2 * (2 * C * C + 2 * C * Cr + 4 * C) * 4
    return io + inter + wts


def _pick_batch_block(B, C, HW, Cr, budget_bytes, num_tc, max_bb=16):
    """Largest divisor of B whose fused block (+ intermediates) fits the VMEM budget.

    Returns None if even bb=1 does not fit (caller falls back to the HW-tiled path).
    Only multi-TC chips keep >= 2 grid steps; on single-TC chips the grid is a serial
    loop, so bb grows to the budget to amortize per-step overhead.
    """
    cap = min(B, max_bb)
    if num_tc >= 2 and B >= 2:
        cap = min(cap, max(1, B // 2))
    best = None
    for d in range(1, cap + 1):
        if B % d == 0 and _fused_vmem_bytes(d, C, HW, Cr) <= budget_bytes:
            best = d
    return best


def _pick_hw_tile(C, HW, budget_bytes):
    """Largest 128-multiple divisor of HW whose tiled-path working set fits the budget."""
    if HW % 128 != 0:
        return None                       # tiled path requires lane-aligned tiles
    cap = budget_bytes // (12 * C * 4)    # max(pass1, pass2) bytes ~ 12 * C * thw * 4
    best = 128
    t = 256
    while t <= HW:
        if HW % t == 0 and t <= cap:
            best = t
        t += 128
    return best


# ---------------------------------------------------------------------------
# pallas_call wrappers
# ---------------------------------------------------------------------------


def _run_fused(x, w1_t, w2_t, bias_pack, wse1_t, wse2_t, *, bb, vmem_limit):
    B, C, HW = x.shape
    Cr = wse1_t.shape[0]
    full = lambda shape: pl.BlockSpec(shape, lambda g: (0,) * len(shape))

    kernel = functools.partial(_rdcab_fused_kernel, bb=bb, cr=Cr)
    return pl.pallas_call(
        kernel,
        out_shape=jax.ShapeDtypeStruct((B, C, HW), jnp.float32),
        grid_spec=pltpu.PrefetchScalarGridSpec(
            num_scalar_prefetch=0,
            grid=(B // bb,),
            in_specs=[
                pl.BlockSpec((bb, C, HW), lambda g: (g, 0, 0)),   # x (batch-tiled)
                full((C, C)),     # fc1 weight (out, in)
                full((C, C)),     # fc2 weight (out, in)
                full((C, 4)),     # packed biases [b1 | b2 | bse1(padded) | bse2]
                full((Cr, C)),    # SE conv1 (1x1) weight
                full((C, Cr)),    # SE conv2 (1x1) weight
            ],
            out_specs=pl.BlockSpec((bb, C, HW), lambda g: (g, 0, 0)),
        ),
        compiler_params=pltpu.CompilerParams(
            dimension_semantics=("parallel",),
            vmem_limit_bytes=vmem_limit,
        ),
        cost_estimate=pl.CostEstimate(
            flops=int(B * (4 * C * C * HW + 4 * C * Cr + 10 * C * HW)),
            transcendentals=int(B * (C * HW + C)),
            bytes_accessed=int(2 * B * C * HW * 4
                               + (2 * C * C + 2 * C * Cr + 4 * C) * 4),
        ),
    )(x, w1_t, w2_t, bias_pack, wse1_t, wse2_t)


def _run_tiled(x, w1_t, w2_t, bias_pack, wse1_t, wse2_t, *, thw, vmem_limit):
    B, C, HW = x.shape
    Cr = wse1_t.shape[0]
    n_t = HW // thw

    # Pass 1: LN + MLP per (image, HW tile); accumulate per-image channel sums into a
    # resident (1, C, 1) output block across the "arbitrary" HW axis.
    h, pool = pl.pallas_call(
        _rdcab_pass1_kernel,
        out_shape=(jax.ShapeDtypeStruct((B, C, HW), jnp.float32),
                   jax.ShapeDtypeStruct((B, C, 1), jnp.float32)),
        grid_spec=pltpu.PrefetchScalarGridSpec(
            num_scalar_prefetch=0,
            grid=(B, n_t),
            in_specs=[
                pl.BlockSpec((1, C, thw), lambda b, t: (b, 0, t)),
                pl.BlockSpec((C, C), lambda b, t: (0, 0)),
                pl.BlockSpec((C, C), lambda b, t: (0, 0)),
                pl.BlockSpec((C, 4), lambda b, t: (0, 0)),
            ],
            out_specs=[
                pl.BlockSpec((1, C, thw), lambda b, t: (b, 0, t)),
                pl.BlockSpec((1, C, 1), lambda b, t: (b, 0, 0)),
            ],
        ),
        compiler_params=pltpu.CompilerParams(
            dimension_semantics=("parallel", "arbitrary"),
            vmem_limit_bytes=vmem_limit,
        ),
        cost_estimate=pl.CostEstimate(
            flops=int(B * (4 * C * C * HW + 9 * C * HW)),
            transcendentals=int(B * C * HW),
            bytes_accessed=int(2 * B * C * HW * 4 + B * C * 4
                               + (2 * C * C + 4 * C) * 4),
        ),
    )(x, w1_t, w2_t, bias_pack)

    # Pass 2: per-image SE (once, at t == 0) into a VMEM scratch, then scale + residual.
    kernel2 = functools.partial(_rdcab_pass2_kernel, cr=Cr, inv_hw=1.0 / HW)
    out = pl.pallas_call(
        kernel2,
        out_shape=jax.ShapeDtypeStruct((B, C, HW), jnp.float32),
        grid_spec=pltpu.PrefetchScalarGridSpec(
            num_scalar_prefetch=0,
            grid=(B, n_t),
            in_specs=[
                pl.BlockSpec((1, C, thw), lambda b, t: (b, 0, t)),   # x
                pl.BlockSpec((1, C, thw), lambda b, t: (b, 0, t)),   # h (unscaled MLP out)
                pl.BlockSpec((1, C, 1), lambda b, t: (b, 0, 0)),     # per-image pooled sums
                pl.BlockSpec((Cr, C), lambda b, t: (0, 0)),
                pl.BlockSpec((C, Cr), lambda b, t: (0, 0)),
                pl.BlockSpec((C, 4), lambda b, t: (0, 0)),
            ],
            out_specs=pl.BlockSpec((1, C, thw), lambda b, t: (b, 0, t)),
            scratch_shapes=[pltpu.VMEM((C, 1), jnp.float32)],
        ),
        compiler_params=pltpu.CompilerParams(
            dimension_semantics=("parallel", "arbitrary"),
            vmem_limit_bytes=vmem_limit,
        ),
        cost_estimate=pl.CostEstimate(
            flops=int(B * (4 * C * Cr + 3 * C * HW)),
            transcendentals=int(B * C),
            bytes_accessed=int(3 * B * C * HW * 4 + B * C * 4
                               + (2 * C * Cr + 4 * C) * 4),
        ),
    )(x, h, pool, wse1_t, wse2_t, bias_pack)
    return out


def rdcab_forward(x_nchw, params, *, force_path=None, force_hw_tile=None):
    """x_nchw: (B, C, H, W) float32. params: weights (in, out) + biases (1, out).

    force_path: None (auto), "fused" (whole-image blocks) or "tiled" (two-pass HW tiles).
    """
    B, C, H, W = x_nchw.shape
    HW = H * W
    Cr = params["wse1"].shape[1]

    vmem_phys, num_tc = _tpu_vmem_and_cores()
    budget = (vmem_phys * 5) // 8                    # ~40 MiB on v7x, ~80 MiB on v5e/v6e
    vmem_limit = int(min(vmem_phys - (8 << 20), budget + (16 << 20)))

    # NCHW consumed directly -- only a free reshape, no transposes (HW is the lane axis;
    # when H*W is not a multiple of 128 stores fall back to masked partial stores).
    x = x_nchw.reshape(B, C, HW)

    # Pre-transpose the (tiny) weights to (out, in); pack the 4 bias vectors as columns.
    w1_t = params["w1"].T
    w2_t = params["w2"].T
    wse1_t = params["wse1"].T
    wse2_t = params["wse2"].T
    bias_pack = jnp.stack(
        [params["b1"].reshape(C),
         params["b2"].reshape(C),
         jnp.pad(params["bse1"].reshape(Cr), (0, C - Cr)),
         params["bse2"].reshape(C)],
        axis=1).astype(jnp.float32)                  # (C, 4)

    bb = _pick_batch_block(B, C, HW, Cr, budget, num_tc)
    if force_hw_tile is not None:
        assert HW % force_hw_tile == 0 and force_hw_tile % 128 == 0
        thw = force_hw_tile
    else:
        thw = _pick_hw_tile(C, HW, budget)

    if force_path == "fused":
        use_fused = True
    elif force_path == "tiled":
        use_fused = thw is None          # can only tile when HW is 128-aligned
    else:
        use_fused = (bb is not None) or (thw is None)

    if use_fused:
        out = _run_fused(x, w1_t, w2_t, bias_pack, wse1_t, wse2_t,
                         bb=(bb if bb is not None else 1), vmem_limit=vmem_limit)
    else:
        out = _run_tiled(x, w1_t, w2_t, bias_pack, wse1_t, wse2_t,
                         thw=thw, vmem_limit=vmem_limit)
    return out.reshape(B, C, H, W)


# ---------------------------------------------------------------------------
# Synthetic params + pure-JAX reference
# ---------------------------------------------------------------------------


def init_params(key, features, reduction=4):
    """Deterministic synthetic parameters (weights (in, out), biases (1, out))."""
    C = features
    Cr = max(C // reduction, 1)
    keys = jax.random.split(key, 8)

    def lin(k, fan_in, shape):
        return jax.random.normal(k, shape, jnp.float32) / math.sqrt(fan_in)

    return {
        "w1": lin(keys[0], C, (C, C)),
        "b1": lin(keys[1], C, (1, C)),
        "w2": lin(keys[2], C, (C, C)),
        "b2": lin(keys[3], C, (1, C)),
        "wse1": lin(keys[4], C, (C, Cr)),
        "bse1": lin(keys[5], C, (1, Cr)),
        "wse2": lin(keys[6], Cr, (Cr, C)),
        "bse2": lin(keys[7], Cr, (1, C)),
    }


def rdcab_reference(x_nchw, params):
    """Pure-JAX reference of the PyTorch forward path (a=0), for sanity checking."""
    x = jnp.transpose(x_nchw, (0, 2, 3, 1))                     # NHWC
    mean = jnp.mean(x, axis=-1, keepdims=True)
    var = jnp.mean((x - mean) ** 2, axis=-1, keepdims=True)
    y = (x - mean) / jnp.sqrt(var + 1e-5)
    h = _exact_gelu(y @ params["w1"] + params["b1"]) @ params["w2"] + params["b2"]
    pooled = jnp.mean(h, axis=(1, 2), keepdims=True)            # (B,1,1,C)
    s = jnp.maximum(pooled @ params["wse1"] + params["bse1"], 0.0)
    s = jax.nn.sigmoid(s @ params["wse2"] + params["bse2"])
    out = x + h * s
    return jnp.transpose(out, (0, 3, 1, 2))


if __name__ == "__main__":
    B, C, H, W = 2, 32, 16, 16   # features = 32, channels_reduction = 4 -> bottleneck 8
    key = jax.random.PRNGKey(0)
    kx, kp = jax.random.split(key)
    x = jax.random.normal(kx, (B, C, H, W), jnp.float32)
    params = init_params(kp, features=C, reduction=4)

    ref = jax.block_until_ready(rdcab_reference(x, params))

    # Auto path (fused whole-image blocks at this small size).
    out = jax.block_until_ready(rdcab_forward(x, params))
    assert out.shape == (B, C, H, W)
    assert jnp.max(jnp.abs(out - ref)) < 1e-4, "fused kernel mismatch vs reference"

    # Also exercise the HW-tiled two-pass path (auto-selected for large H*W / small VMEM).
    out_t = jax.block_until_ready(
        rdcab_forward(x, params, force_path="tiled", force_hw_tile=128))
    assert jnp.max(jnp.abs(out_t - ref)) < 1e-4, "tiled kernel mismatch vs reference"

    print("KERNEL_OK")
</pallas_src>

<mosaic_0001>
module attributes {stable_mosaic.version = 11 : i64} {
  func.func @_rdcab_fused_kernel(%arg0: i32, %arg1: memref<1x32x256xf32, #tpu.memory_space<vmem>>, %arg2: memref<32x32xf32, #tpu.memory_space<vmem>>, %arg3: memref<32x32xf32, #tpu.memory_space<vmem>>, %arg4: memref<32x4xf32, #tpu.memory_space<vmem>>, %arg5: memref<8x32xf32, #tpu.memory_space<vmem>>, %arg6: memref<32x8xf32, #tpu.memory_space<vmem>>, %arg7: memref<1x32x256xf32, #tpu.memory_space<vmem>>) attributes {dimension_semantics = [#tpu.dimension_semantics<parallel>], iteration_bounds = array<i64: 2>, scalar_prefetch = 0 : i64, scratch_operands = 0 : i64, tpu.core_type = #tpu.core_type<tc>, window_params = [{transform_indices = @transform_0, window_bounds = array<i64: 1, 32, 256>}, {pipeline_mode = #tpu.pipeline_mode<synchronous>, transform_indices = @transform_1, window_bounds = array<i64: 32, 32>}, {pipeline_mode = #tpu.pipeline_mode<synchronous>, transform_indices = @transform_2, window_bounds = array<i64: 32, 32>}, {pipeline_mode = #tpu.pipeline_mode<synchronous>, transform_indices = @transform_3, window_bounds = array<i64: 32, 4>}, {pipeline_mode = #tpu.pipeline_mode<synchronous>, transform_indices = @transform_4, window_bounds = array<i64: 8, 32>}, {pipeline_mode = #tpu.pipeline_mode<synchronous>, transform_indices = @transform_5, window_bounds = array<i64: 32, 8>}, {transform_indices = @transform_6, window_bounds = array<i64: 1, 32, 256>}]} {
    %c0 = arith.constant 0 : index
    %c0_0 = arith.constant 0 : index
    %0 = vector.load %arg2[%c0, %c0_0] : memref<32x32xf32, #tpu.memory_space<vmem>>, vector<32x32xf32>
    %c0_1 = arith.constant 0 : index
    %c0_2 = arith.constant 0 : index
    %1 = vector.load %arg3[%c0_1, %c0_2] : memref<32x32xf32, #tpu.memory_space<vmem>>, vector<32x32xf32>
    %c0_3 = arith.constant 0 : index
    %c0_4 = arith.constant 0 : index
    %2 = vector.load %arg5[%c0_3, %c0_4] : memref<8x32xf32, #tpu.memory_space<vmem>>, vector<8x32xf32>
    %c0_5 = arith.constant 0 : index
    %c0_6 = arith.constant 0 : index
    %3 = vector.load %arg6[%c0_5, %c0_6] : memref<32x8xf32, #tpu.memory_space<vmem>>, vector<32x8xf32>
    %c0_7 = arith.constant 0 : index
    %c0_8 = arith.constant 0 : index
    %4 = vector.load %arg4[%c0_7, %c0_8] : memref<32x4xf32, #tpu.memory_space<vmem>>, vector<32x1xf32>
    %c0_9 = arith.constant 0 : index
    %c1 = arith.constant 1 : index
    %5 = vector.load %arg4[%c0_9, %c1] : memref<32x4xf32, #tpu.memory_space<vmem>>, vector<32x1xf32>
    %c0_10 = arith.constant 0 : index
    %c2 = arith.constant 2 : index
    %6 = vector.load %arg4[%c0_10, %c2] : memref<32x4xf32, #tpu.memory_space<vmem>>, vector<8x1xf32>
    %c0_11 = arith.constant 0 : index
    %c3 = arith.constant 3 : index
    %7 = vector.load %arg4[%c0_11, %c3] : memref<32x4xf32, #tpu.memory_space<vmem>>, vector<32x1xf32>
    %c0_i32 = arith.constant 0 : i32
    %8 = arith.index_cast %c0_i32 : i32 to index
    %c0_12 = arith.constant 0 : index
    %c0_13 = arith.constant 0 : index
    %9 = vector.load %arg1[%8, %c0_12, %c0_13] : memref<1x32x256xf32, #tpu.memory_space<vmem>>, vector<1x32x256xf32>
    %10 = vector.shape_cast %9 : vector<1x32x256xf32> to vector<32x256xf32>
    %cst = arith.constant dense<0.000000e+00> : vector<256xf32>
    %11 = vector.multi_reduction <add>, %10, %cst [0] : vector<32x256xf32> to vector<256xf32>
    %12 = vector.shape_cast %11 : vector<256xf32> to vector<1x256xf32>
    %cst_14 = arith.constant 3.200000e+01 : f32
    %13 = vector.broadcast %cst_14 : f32 to vector<1x256xf32>
    %14 = arith.divf %12, %13 : vector<1x256xf32>
    %15 = vector.broadcast %14 : vector<1x256xf32> to vector<32x256xf32>
    %16 = arith.subf %10, %15 : vector<32x256xf32>
    %17 = arith.mulf %16, %16 : vector<32x256xf32>
    %cst_15 = arith.constant dense<0.000000e+00> : vector<256xf32>
    %18 = vector.multi_reduction <add>, %17, %cst_15 [0] : vector<32x256xf32> to vector<256xf32>
    %19 = vector.shape_cast %18 : vector<256xf32> to vector<1x256xf32>
    %cst_16 = arith.constant 3.200000e+01 : f32
    %20 = vector.broadcast %cst_16 : f32 to vector<1x256xf32>
    %21 = arith.divf %19, %20 : vector<1x256xf32>
    %cst_17 = arith.constant 9.99999974E-6 : f32
    %22 = vector.broadcast %cst_17 : f32 to vector<1x256xf32>
    %23 = arith.addf %21, %22 : vector<1x256xf32>
    %24 = math.sqrt %23 : vector<1x256xf32>
    %25 = vector.broadcast %24 : vector<1x256xf32> to vector<32x256xf32>
    %26 = arith.divf %16, %25 : vector<32x256xf32>
    %cst_18 = arith.constant dense<0.000000e+00> : vector<32x256xf32>
    %27 = tpu.matmul %0, %26, %cst_18 {dimension_numbers = #tpu.dot_dimension_numbers<[1], [0], [0], [1], [0, 0, 1, 1], [], []>} : vector<32x32xf32>, vector<32x256xf32>, vector<32x256xf32> -> vector<32x256xf32>
    %28 = vector.broadcast %4 : vector<32x1xf32> to vector<32x256xf32>
    %29 = arith.addf %27, %28 : vector<32x256xf32>
    %cst_19 = arith.constant 5.000000e-01 : f32
    %30 = vector.broadcast %cst_19 : f32 to vector<32x256xf32>
    %31 = arith.mulf %30, %29 : vector<32x256xf32>
    %cst_20 = arith.constant 0.707106769 : f32
    %32 = vector.broadcast %cst_20 : f32 to vector<32x256xf32>
    %33 = arith.mulf %29, %32 : vector<32x256xf32>
    %34 = math.erf %33 : vector<32x256xf32>
    %cst_21 = arith.constant 1.000000e+00 : f32
    %35 = vector.broadcast %cst_21 : f32 to vector<32x256xf32>
    %36 = arith.addf %35, %34 : vector<32x256xf32>
    %37 = arith.mulf %31, %36 : vector<32x256xf32>
    %cst_22 = arith.constant dense<0.000000e+00> : vector<32x256xf32>
    %38 = tpu.matmul %1, %37, %cst_22 {dimension_numbers = #tpu.dot_dimension_numbers<[1], [0], [0], [1], [0, 0, 1, 1], [], []>} : vector<32x32xf32>, vector<32x256xf32>, vector<32x256xf32> -> vector<32x256xf32>
    %39 = vector.broadcast %5 : vector<32x1xf32> to vector<32x256xf32>
    %40 = arith.addf %38, %39 : vector<32x256xf32>
    %cst_23 = arith.constant dense<0.000000e+00> : vector<32xf32>
    %41 = vector.multi_reduction <add>, %40, %cst_23 [1] : vector<32x256xf32> to vector<32xf32>
    %42 = vector.shape_cast %41 : vector<32xf32> to vector<32x1xf32>
    %cst_24 = arith.constant 2.560000e+02 : f32
    %43 = vector.broadcast %cst_24 : f32 to vector<32x1xf32>
    %44 = arith.divf %42, %43 : vector<32x1xf32>
    %cst_25 = arith.constant dense<0.000000e+00> : vector<8x1xf32>
    %45 = tpu.matmul %2, %44, %cst_25 {dimension_numbers = #tpu.dot_dimension_numbers<[1], [0], [0], [1], [0, 0, 1, 1], [], []>} : vector<8x32xf32>, vector<32x1xf32>, vector<8x1xf32> -> vector<8x1xf32>
    %46 = arith.addf %45, %6 : vector<8x1xf32>
    %cst_26 = arith.constant 0.000000e+00 : f32
    %47 = vector.broadcast %cst_26 : f32 to vector<8x1xf32>
    %48 = arith.maximumf %46, %47 : vector<8x1xf32>
    %cst_27 = arith.constant dense<0.000000e+00> : vector<32x1xf32>
    %49 = tpu.matmul %3, %48, %cst_27 {dimension_numbers = #tpu.dot_dimension_numbers<[1], [0], [0], [1], [0, 0, 1, 1], [], []>} : vector<32x8xf32>, vector<8x1xf32>, vector<32x1xf32> -> vector<32x1xf32>
    %50 = arith.addf %49, %7 : vector<32x1xf32>
    %51 = arith.negf %50 : vector<32x1xf32>
    %52 = math.exp %51 : vector<32x1xf32>
    %cst_28 = arith.constant 1.000000e+00 : f32
    %53 = vector.broadcast %cst_28 : f32 to vector<32x1xf32>
    %54 = arith.addf %53, %52 : vector<32x1xf32>
    %55 = arith.divf %53, %54 : vector<32x1xf32>
    %56 = arith.index_cast %c0_i32 : i32 to index
    %c0_29 = arith.constant 0 : index
    %c0_30 = arith.constant 0 : index
    %57 = vector.load %arg1[%56, %c0_29, %c0_30] : memref<1x32x256xf32, #tpu.memory_space<vmem>>, vector<1x32x256xf32>
    %58 = vector.shape_cast %57 : vector<1x32x256xf32> to vector<32x256xf32>
    %59 = vector.broadcast %55 : vector<32x1xf32> to vector<32x256xf32>
    %60 = arith.mulf %40, %59 : vector<32x256xf32>
    %61 = arith.addf %58, %60 : vector<32x256xf32>
    %62 = arith.index_cast %c0_i32 : i32 to index
    %c0_31 = arith.constant 0 : index
    %c0_32 = arith.constant 0 : index
    %63 = vector.load %arg7[%62, %c0_31, %c0_32] : memref<1x32x256xf32, #tpu.memory_space<vmem>>, vector<1x32x256xf32>
    %64 = vector.shape_cast %63 : vector<1x32x256xf32> to vector<32x256xf32>
    %65 = vector.shape_cast %61 : vector<32x256xf32> to vector<1x32x256xf32>
    tpu.vector_store %arg7[%62, %c0_31, %c0_32], %65 {strides = array<i32>} : memref<1x32x256xf32, #tpu.memory_space<vmem>>, vector<1x32x256xf32>,
    %c1_i32 = arith.constant 1 : i32
    return
  }
  func.func @transform_0(%arg0: i32) -> (i32, i32, i32) {
    %c0_i32 = arith.constant 0 : i32
    %c0_i32_0 = arith.constant 0 : i32
    %c0_i32_1 = arith.constant 0 : i32
    return %arg0, %c0_i32, %c0_i32_0 : i32, i32, i32
  }
  func.func @transform_1(%arg0: i32) -> (i32, i32) {
    %c0_i32 = arith.constant 0 : i32
    %c0_i32_0 = arith.constant 0 : i32
    %c0_i32_1 = arith.constant 0 : i32
    return %c0_i32, %c0_i32_0 : i32, i32
  }
  func.func @transform_2(%arg0: i32) -> (i32, i32) {
    %c0_i32 = arith.constant 0 : i32
    %c0_i32_0 = arith.constant 0 : i32
    %c0_i32_1 = arith.constant 0 : i32
    return %c0_i32, %c0_i32_0 : i32, i32
  }
  func.func @transform_3(%arg0: i32) -> (i32, i32) {
    %c0_i32 = arith.constant 0 : i32
    %c0_i32_0 = arith.constant 0 : i32
    %c0_i32_1 = arith.constant 0 : i32
    return %c0_i32, %c0_i32_0 : i32, i32
  }
  func.func @transform_4(%arg0: i32) -> (i32, i32) {
    %c0_i32 = arith.constant 0 : i32
    %c0_i32_0 = arith.constant 0 : i32
    %c0_i32_1 = arith.constant 0 : i32
    return %c0_i32, %c0_i32_0 : i32, i32
  }
  func.func @transform_5(%arg0: i32) -> (i32, i32) {
    %c0_i32 = arith.constant 0 : i32
    %c0_i32_0 = arith.constant 0 : i32
    %c0_i32_1 = arith.constant 0 : i32
    return %c0_i32, %c0_i32_0 : i32, i32
  }
  func.func @transform_6(%arg0: i32) -> (i32, i32, i32) {
    %c0_i32 = arith.constant 0 : i32
    %c0_i32_0 = arith.constant 0 : i32
    %c0_i32_1 = arith.constant 0 : i32
    return %arg0, %c0_i32, %c0_i32_0 : i32, i32, i32
  }
}

</mosaic_0001>

<bundles_post_ra>
// kernel: tpu_custom_call.1
= control target key start
LH: loop header
LB: loop body
LE: loop exit
PB: predicated region body
PF: predicated region fallthrough
CT: control target
= control target key end

     0   :  { %11 = vsyncpa [#allocation3], 0  ;;  %s1685_s0 = inlined_call_operand.hbm [shape: f32[2,32,256], index: 0, kind: input, shape index: {}]   ;;  %s1686_s1 = inlined_call_operand.vmem [shape: f32[32,32], index: 1, kind: input, shape index: {}]   ;;  %s1687_s2 = inlined_call_operand.vmem [shape: f32[32,32], index: 2, kind: input, shape index: {}]   ;;  %s1688_s3 = inlined_call_operand.vmem [shape: f32[32,4], index: 3, kind: input, shape index: {}]   ;;  %s1689_s4 = inlined_call_operand.vmem [shape: f32[8,32], index: 4, kind: input, shape index: {}]   ;;  %s1690_s5 = inlined_call_operand.vmem [shape: f32[32,8], index: 5, kind: input, shape index: {}]   ;;  %s1691_s6 = inlined_call_operand.hbm [shape: f32[2,32,256], index: 6, kind: output, shape index: {}]  }
   0x1   :  { %13 = vsyncpa [#allocation3 + $0x1], 0 }
   0x2   :  { %14 = vsyncpa [#allocation4], 0 }
   0x3   :  { %16 = vsyncpa [#allocation4 + $0x1], 0  ;;  %s1349_s21 = smov 0   ;;  %s1351_s22 = smov 0  }
   0x4   :  { %s1353_s23 = smov 0   ;;  %s1355_s24 = smov 0  }
   0x5 LB: > { %s1370_s25 = sadd.s32 4294967295, %s1299_s24   ;;  %s1016_s26 = sadd.s32 4294967294, %s1299_s24   ;;  %s1299_s24 = sphi %s1355_s24, %s1704_s24   ;;  %s1295_s23 = sphi %s1353_s23, %s1703_s23   ;;  %s1291_s22 = sphi %s1351_s22, %s1702_s22   ;;  %s1287_s21 = sphi %s1349_s21, %s1701_s21  }
   0x6   : > { %s1374_s27 = sadd.s32 1, %s1299_s24   ;;  %s29_s28 = sadd.s32 1, %s1295_s23 }
   0x7   : > { %s26_s29 = ssub.s32 %s1299_s24, %s1374_s27  ;;  %p36_p0 = scmp.ne.s32.totalorder %s1295_s23, %s1291_s22 }
   0x8   : > { %p27_p1 = scmp.eq.s32.totalorder %s26_s29, 0  ;;  %p37_p2 = scmp.eq.s32.totalorder %s1299_s24, 0 }
   0x9   : > { %p42_p3 = scmp.ne.s32.totalorder %s1291_s22, %s1287_s21  ;;  %p43_p4 = scmp.eq.s32.totalorder %s1370_s25, 0 }
   0xa   : > { %s1386_s30 = scalar_select %p27_p1, %s1295_s23, %s29_s28  }
   0xb   : > { %p1388_p5 = por %p37_p2, %p36_p0  ;;  %p1392_p6 = por %p43_p4, %p42_p3 }
   0xc   : > { %p171_p7 = scmp.eq.s32.totalorder %s1370_s25, 1  ;;  %p177_p8 = scmp.eq.s32.totalorder %s1016_s26, 1 }
   0xd   : > { %p1112_p10 = scmp.lt.s32.totalorder %s1299_s24, 2  ;;  %s212_s11 = sand.u32 1, %s1295_s23  }
   0xe   : > { %p1399_p11 = por %p171_p7, %p36_p0  ;;  %p1403_p12 = por %p177_p8, %p42_p3 }
   0xf   : > { %s1047_s12 = sshll.u32 %s1299_s24, 10  ;;  %s1019_s13 = sshll.u32 %s212_s11, 6 }
  0x10   : > { %s1695_s9 = scalar_select %p1399_p11, 1, 0 }
  0x11   : > { %s1696_s10 = scalar_select %p1403_p12, 1, 0 }
  0x12   : > { %s1412_s16 = scalar_lea.hbm %s1685_s0, %s1047_s12  ;;  %s216_s17 = scalar_lea.vmem [#allocation2], %s1019_s13 }
  0x13   : > { %s223_s18 = sshll.u32 %s216_s17, 4  ;;  %p1416_p13 = pnand %p1112_p10, %p1388_p5  ;;  %s1420_s18 = int_to_ptr.vmem [resolvable:$true] %s223_s18 }
  0x14   : > { %s1422_s20 = scalar_lea.sflag [#allocation3], %s212_s11  ;;  %s1203_s26 = scalar_lea.hbm %s1412_s16, 1024 }
  0x15   : > { %p1204_p0 = scmp.ne.s32.totalorder %s1412_s16, %s1203_s26  ;;  %p1205_p1 = pneg %p1416_p13 }
  0x16   : > { %s1208_s7 = scalar_lea.hbm %s1685_s0, 2048  ;;  %p1209_p4 = scmp.lt.u32.totalorder %s1412_s16, %s1685_s0 }
  0x17   : > { %p1206_p2 = pnand %p1205_p1, %p1204_p0  ;;  %p1210_p5 = scmp.lt.u32.totalorder %s1208_s7, %s1203_s26 }
  0x18   : > { %p1212_p8 = scmp.lt.u32.totalorder %s1203_s26, %s1412_s16 }
  0x19   : > { %p1207_p3 = pneg %p1206_p2  ;;  %p1211_p7 = por %p1210_p5, %p1209_p4 }
  0x1b   : > { %p1213_p10 = por %p1212_p8, %p1211_p7 }
  0x1d   : > { %p1214_p9 = pnand %p1213_p10, %p1207_p3 }
  0x1f   : > { %1217 = shalt.err (!%p1214_p9)
}
  0x20   : > { %s1218_s11 = scalar_lea.vmem %s1420_s18, 1024  ;;  %s1301_s14 = smov [#allocation2]  }
  0x21   : > { %p1219_p0 = scmp.ne.s32.totalorder %s1420_s18, %s1218_s11  ;;  %s1223_s15 = sshll.u32 %s1301_s14, 4  ;;  %s1224_s15 = int_to_ptr.vmem [resolvable:$false] %s1223_s15 }
  0x22   : > { %s1225_s17 = scalar_lea.vmem %s1224_s15, 2048  ;;  %p1226_p11 = scmp.lt.s32.totalorder %s1420_s18, %s1224_s15 }
  0x23   : > { %p1221_p2 = pnand %p1219_p0, %p1205_p1  ;;  %p1227_p4 = scmp.lt.s32.totalorder %s1225_s17, %s1218_s11 }
  0x25   : > { %p1222_p12 = pneg %p1221_p2  ;;  %p1228_p5 = por %p1227_p4, %p1226_p11 }
  0x27   : > { %p1229_p7 = pnand %p1228_p5, %p1222_p12 }
  0x29   : > { %1232 = shalt.err (!%p1229_p7)
}
  0x2a   : > { %s1302_s26 = smov 256   ;;  %s1303_s28 = smov 16  }
  0x2b   : > { %1107 = dma.hbm_to_vmem [thread:$0]  (!%p1416_p13), %s1412_s16, 1024, %s1420_s18, %s1422_s20, %s1302_s26, %s1302_s26, %s1303_s28  }
  0x2c   : > { %p1022_p9 = scmp.ge.s32.totalorder %s1299_s24, 1  ;;  %p231_p1 = scmp.lt.s32.totalorder %s1299_s24, 3 }
  0x2e   : > { %p232_p3 = pnand %p1022_p9, %p231_p1 }
  0x2f   : > { %s1453_s29 = sand.u32 (!%p232_p3), 1, %s1291_s22  }
  0x30   : > { %235 = sbr.rel (%p232_p3) target bundleno = 1380 (0x564), region = 44  ;;  %s1023_s7 = sshll.u32 (!%p232_p3), %s1453_s29, 6 }
  0x31   : > { %s238_s12 = scalar_lea.sflag (!%p232_p3), [#allocation3], %s1453_s29  ;;  %s241_s13 = scalar_lea.vmem (!%p232_p3), [#allocation2], %s1023_s7 }
  0x37   : > { %1278 = dma.done.wait (%p1392_p6), %s238_s12, 1024  }
  0x38   : > { %1280 = vsyncadd (%p1392_p6), %s238_s12, 4294966272  ;;  %v1304_v0 = vmov 0.0   ;;  %v1305_v1 = vmov 0   ;;  %v1467_v2 = vld [vmem:[%s241_s13 + $0x8] sm:$0xff]  ;;  %v1469_v3 = vld [vmem:[%s241_s13 + $0x18] sm:$0xff]  ;;  %vm398_vm4 = vcmask 261120  }
  0x39   : > { %475 = vmatprep.mubr.f32.mxu0 %v1304_v0  ;;  %1157 = vset.pattern.permute.xlu0 %v1305_v1  ;;  %v1471_v4 = vld [vmem:[%s241_s13 + $0x28] sm:$0xff]  ;;  %v304_v5 = vadd.f32 %v1469_v3, %v1467_v2  ;;  %v1475_v6 = vld [vmem:[%s241_s13] sm:$0xff]  ;;  %v1477_v7 = vld [vmem:[%s241_s13 + $0x10] sm:$0xff]  ;;  %vm1308_vm5 = vmmov 0   ;;  %s1309_s12 = smov 126   ;;  %vm763_vm6 = vcmask 64512  }
  0x3a   : > { %1158 = vset.pattern.permute.xlu1 %v1305_v1  ;;  %632 = vmatprep.mubr.f32.mxu1 %v1304_v0  ;;  %v1479_v8 = vld [vmem:[%s241_s13 + $0x38] sm:$0xff]  ;;  %v1481_v9 = vld [vmem:[%s241_s13 + $0x20] sm:$0xff]  ;;  %v295_v10 = vadd.f32 %v1477_v7, %v1475_v6  ;;  %v1486_v12 = vld [vmem:[%s241_s13 + $0x30] sm:$0xff]  ;;  %s1310_s19 = smov 125   ;;  %s1048_s28 = sshll.u32 %s1370_s25, 10 }
  0x3b   : > { %v305_v11 = vadd.f32 %v304_v5, %v1471_v4  ;;  %v1492_v14 = vld [vmem:[%s1688_s3] sm:$0xff]  ;;  %v1497_v15 = vld [vmem:[%s1688_s3 + $0x10] sm:$0xff]  ;;  %v1506_v18 = vld [vmem:[%s1688_s3 + $0x8] sm:$0xff]  ;;  %s930_s16 = scalar_lea.sflag [#allocation4], %s1453_s29  ;;  %p1698_p11 = scmp.ne.s32.totalorder %s1695_s9, 0 }
  0x3c   : > { %v296_v13 = vadd.f32 %v295_v10, %v1481_v9  ;;  %380 = vperm.xlu0 %1157, %v1492_v14   ;;  %390 = vperm.xlu1 %1158, %v1497_v15   ;;  %v1511_v19 = vld [vmem:[%s1688_s3 + $0x18] sm:$0xff] }
  0x3d   : > { %v306_v16 = vadd.f32 %v305_v11, %v1479_v8 }
  0x3e   : > { %v297_v17 = vadd.f32 %v296_v13, %v1486_v12 }
  0x3f   : > { %v307_v20 = vrot.slane %v306_v16, 4 }
  0x40   : > { %v298_v21 = vrot.slane %v297_v17, 4  ;;  %385 = vperm.xlu0 %1157, %v1506_v18   ;;  %395 = vperm.xlu1 %1158, %v1511_v19  }
  0x41   : > { %v308_v22 = vadd.f32 %v307_v20, %v306_v16 }
  0x42   : > { %v299_v23 = vadd.f32 %v298_v21, %v297_v17 }
  0x43   : > { %v309_v24 = vrot.slane %v308_v22, 2 }
  0x44   : > { %v300_v25 = vrot.slane %v299_v23, 2 }
  0x45   : > { %v310_v26 = vadd.f32 %v309_v24, %v308_v22 }
  0x46   : > { %v301_v27 = vadd.f32 %v300_v25, %v299_v23 }
  0x47   : > { %v311_v28 = vrot.slane %v310_v26, 1 }
  0x48   : > { %v302_v29 = vrot.slane %v301_v27, 1 }
  0x49   : > { %v312_v30 = vadd.f32 %v311_v28, %v310_v26 }
  0x4a   : > { %v303_v31 = vadd.f32 %v302_v29, %v301_v27 }
  0x4b   : > { %v315_v32 = vmul.f32 0.03125, %v312_v30 }
  0x4c   : > { %v314_v33 = vmul.f32 0.03125, %v303_v31 }
  0x4d   : > { %v317_v34 = vsub.f32 %v1467_v2, %v315_v32  ;;  %v319_v35 = vsub.f32 %v1469_v3, %v315_v32  ;;  %v321_v36 = vsub.f32 %v1471_v4, %v315_v32  ;;  %v323_v37 = vsub.f32 %v1479_v8, %v315_v32 }
  0x4e   : > { %v316_v38 = vsub.f32 %v1475_v6, %v314_v33  ;;  %v318_v39 = vsub.f32 %v1477_v7, %v314_v33  ;;  %v320_v40 = vsub.f32 %v1481_v9, %v314_v33  ;;  %v322_v41 = vsub.f32 %v1486_v12, %v314_v33 }
  0x4f   : > { %v325_v42 = vmul.f32 %v317_v34, %v317_v34  ;;  %v327_v43 = vmul.f32 %v319_v35, %v319_v35  ;;  %v329_v44 = vmul.f32 %v321_v36, %v321_v36  ;;  %v331_v48 = vmul.f32 %v323_v37, %v323_v37 }
  0x50   : > { %v324_v45 = vmul.f32 %v316_v38, %v316_v38  ;;  %v326_v46 = vmul.f32 %v318_v39, %v318_v39  ;;  %v328_v47 = vmul.f32 %v320_v40, %v320_v40  ;;  %v330_v50 = vmul.f32 %v322_v41, %v322_v41 }
  0x51   : > { %v341_v49 = vadd.f32 %v327_v43, %v325_v42 }
  0x52   : > { %v332_v51 = vadd.f32 %v326_v46, %v324_v45 }
  0x53   : > { %v342_v52 = vadd.f32 %v341_v49, %v329_v44 }
  0x54   : > { %v333_v53 = vadd.f32 %v332_v51, %v328_v47 }
  0x55   : > { %v343_v54 = vadd.f32 %v342_v52, %v331_v48 }
  0x56   : > { %v334_v55 = vadd.f32 %v333_v53, %v330_v50 }
  0x57   : > { %v344_v56 = vrot.slane %v343_v54, 4 }
  0x58   : > { %v335_v57 = vrot.slane %v334_v55, 4 }
  0x59   : > { %v345_v58 = vadd.f32 %v344_v56, %v343_v54  ;;  %v270_v54 = vld [vmem:[%s1686_s1] sm:$0xff] }
  0x5a   : > { %v336_v59 = vadd.f32 %v335_v57, %v334_v55 }
  0x5b   : > { %v346_v60 = vrot.slane %v345_v58, 2 }
  0x5c   : > { %v337_v61 = vrot.slane %v336_v59, 2 }
  0x5d   : > { %v347_v62 = vadd.f32 %v346_v60, %v345_v58 }
  0x5e   : > { %v338_v63 = vadd.f32 %v337_v61, %v336_v59 }
  0x5f   : > { %v348_v5 = vrot.slane %v347_v62, 1 }
  0x60   : > { %v339_v10 = vrot.slane %v338_v63, 1 }
  0x61   : > { %v349_v11 = vadd.f32 %v348_v5, %v347_v62 }
  0x62   : > { %v340_v13 = vadd.f32 %v339_v10, %v338_v63 }
  0x63   : > { %v351_v16 = vmul.f32 0.03125, %v349_v11 }
  0x64   : > { %v350_v17 = vmul.f32 0.03125, %v340_v13 }
  0x65   : > { %v353_v20 = vadd.f32 1e-05, %v351_v16 }
  0x66   : > { %v352_v21 = vadd.f32 1e-05, %v350_v17 }
  0x67   : > { %1163 = vrsqrt.f32 %v353_v20  ;;  %vm363_vm0 = vcmp.eq.f32.partialorder %v353_v20, inf  ;;  %v366_v23 = vand.u32 2147483648, %v353_v20  ;;  %vm365_vm1 = vcmp.eq.f32.partialorder %v353_v20, 0.0 }
  0x68   : > { %1165 = vrsqrt.f32 %v352_v21  ;;  %vm356_vm2 = vcmp.eq.f32.partialorder %v352_v21, inf  ;;  %v359_v26 = vand.u32 2147483648, %v352_v21  ;;  %vm358_vm3 = vcmp.eq.f32.partialorder %v352_v21, 0.0 }
  0x71   : > { %v1164_v22 = vpop.eup %1163 }
  0x72   : > { %v1166_v24 = vpop.eup %1165  ;;  %v362_v25 = vmul.f32 %v1164_v22, %v353_v20 }
  0x73   : > { %v355_v27 = vmul.f32 %v1166_v24, %v352_v21 }
  0x74   : > { %v364_v28 = vsel %vm363_vm0, %v353_v20, %v362_v25 }
  0x75   : > { %v367_v29 = vsel %vm365_vm1, %v366_v23, %v364_v28  ;;  %v357_v30 = vsel %vm356_vm2, %v352_v21, %v355_v27 }
  0x76   : > { %1167 = vrcp.f32 %v367_v29  ;;  %v360_v31 = vsel %vm358_vm3, %v359_v26, %v357_v30 }
  0x77   : > { %1169 = vrcp.f32 %v360_v31 }
  0x80   : > { %v1168_v32 = vpop.eup %1167 }
  0x81   : > { %v1170_v33 = vpop.eup %1169  ;;  %v371_v42 = vmul.f32 %v1168_v32, %v317_v34  ;;  %v373_v43 = vmul.f32 %v1168_v32, %v319_v35  ;;  %v375_v44 = vmul.f32 %v1168_v32, %v321_v36  ;;  %v377_v45 = vmul.f32 %v1168_v32, %v323_v37  ;;  %v271_v34 = vld [vmem:[%s1686_s1 + $0x8] sm:$0xff]  ;;  %v272_v35 = vld [vmem:[%s1686_s1 + $0x10] sm:$0xff]  ;;  %v273_v36 = vld [vmem:[%s1686_s1 + $0x18] sm:$0xff] }
  0x82   : > { %v369_v46 = vmul.f32 %v1170_v33, %v316_v38  ;;  %v372_v47 = vmul.f32 %v1170_v33, %v318_v39  ;;  %v374_v48 = vmul.f32 %v1170_v33, %v320_v40  ;;  %v376_v49 = vmul.f32 %v1170_v33, %v322_v41 }
  0x83   : > { %v1078_v50 = vpack.c.bf16 %v373_v43, %v371_v42  ;;  %v1082_v51 = vpack.c.bf16 %v377_v45, %v375_v44  ;;  %v1306_v37 = vmov 1  }
  0x84   : > { %v1080_v52 = vpack.c.bf16 %v372_v47, %v369_v46  ;;  %v1084_v53 = vpack.c.bf16 %v376_v49, %v374_v48  ;;  %1159 = vset.pattern.permute.xlu0 %v1306_v37  ;;  %1160 = vset.pattern.permute.xlu1 %v1306_v37 }
  0x85   : > { %1079 = vmatprep.subr.bf16.mxu0 %v1078_v50  ;;  %541 = vperm.xlu0 %1159, %v1492_v14  }
  0x86   : > { %1081 = vmatpush1.bf16.msra.mxu0 %v1080_v52  ;;  %545 = vperm.xlu1 %1160, %v1506_v18  }
  0x87   : > { %1083 = vmatprep.subr.bf16.mxu0 %v1082_v51 }
  0x89   : > { %553 = vperm.xlu0 %1159, %v1511_v19  }
  0x8a   : > { %1085 = vmatpush1.bf16.msra.mxu0 %v1084_v53  ;;  %549 = vperm.xlu1 %1160, %v1497_v15  }
  0x8d   : > { %1025 = vmatmul.mubr.msk.f32.vlgmr.msra.gmra.mrb[0].mxu0 %vm398_vm4, %v270_v54  ;;  %1162 = vset.pattern.permute.xlu0 %v1305_v1 }
  0x8e   : > { %481 = vmatprep.mubr.f32.mxu0 %v1304_v0  ;;  %1161 = vset.pattern.permute.xlu1 %v1305_v1 }
  0x91   : > { %1026 = vmatmul.mubr.msk.f32.gmra.mrb[2].mxu0 %vm398_vm4, %v271_v34 }
  0x92   : > { %487 = vmatprep.mubr.f32.mxu0 %v1304_v0 }
  0x95   : > { %1027 = vmatmul.mubr.msk.f32.gmra.mrb[4].mxu0 %vm398_vm4, %v272_v35 }
  0x96   : > { %493 = vmatprep.mubr.f32.mxu0 %v1304_v0 }
  0x99   : > { %1028 = vmatmul.mubr.msk.f32.gmra.mrb[6].mxu0 %vm398_vm4, %v273_v36 }
  0x9a   : > { %1067 = vmatprep.mubr.msk.f32.mxu0 %vm1308_vm5, %v1304_v0 }
  0xbb   : > { %v381_v38 = vpop.permute.xlu0 %380  ;;  %v391_v62 = vpop.permute.xlu1 %390 }
  0xbf   : > { %v386_v56 = vpop.permute.xlu0 %385  ;;  %v396_v20 = vpop.permute.xlu1 %395 }
 0x160   : > { %v477_v39 = vpop.f32.mrb[0].mxu0 }
 0x161   : > { %v478_v40 = vadd.f32 %v477_v39, %v381_v38  ;;  %v479_v41 = vpop.f32.mrb[1].mxu0 }
 0x162   : > { %v480_v55 = vadd.f32 %v479_v41, %v381_v38 }
 0x163   : > { %v508_v57 = vmul.f32 0.70710677, %v478_v40  ;;  %v500_v42 = vmul.f32 0.5, %v478_v40 }
 0x164   : > { %v509_v58 = vmul.f32 0.70710677, %v480_v55  ;;  %v483_v59 = vpop.f32.mrb[2].mxu0  ;;  %v501_v45 = vmul.f32 0.5, %v480_v55 }
 0x165   : > { %1171 = verf.f32 %v508_v57  ;;  %v484_v60 = vadd.f32 %v483_v59, %v386_v56  ;;  %v485_v61 = vpop.f32.mrb[3].mxu0 }
 0x166   : > { %1173 = verf.f32 %v509_v58  ;;  %v486_v63 = vadd.f32 %v485_v61, %v386_v56 }
 0x167   : > { %v510_v5 = vmul.f32 0.70710677, %v484_v60  ;;  %v502_v43 = vmul.f32 0.5, %v484_v60 }
 0x168   : > { %v511_v10 = vmul.f32 0.70710677, %v486_v63  ;;  %v489_v11 = vpop.f32.mrb[4].mxu0  ;;  %v503_v46 = vmul.f32 0.5, %v486_v63 }
 0x169   : > { %1175 = verf.f32 %v510_v5  ;;  %v490_v1 = vadd.f32 %v489_v11, %v391_v62  ;;  %v491_v13 = vpop.f32.mrb[5].mxu0  ;;  %v274_v5 = vld [vmem:[%s1687_s2] sm:$0xff]  ;;  %v276_v11 = vld [vmem:[%s1687_s2 + $0x10] sm:$0xff] }
 0x16a   : > { %1177 = verf.f32 %v511_v10  ;;  %v492_v16 = vadd.f32 %v491_v13, %v391_v62  ;;  %v275_v10 = vld [vmem:[%s1687_s2 + $0x8] sm:$0xff]  ;;  %v542_v13 = vpop.permute.xlu0 %541 }
 0x16b   : > { %v512_v17 = vmul.f32 0.70710677, %v490_v1  ;;  %v504_v39 = vmul.f32 0.5, %v490_v1  ;;  %v277_v1 = vld [vmem:[%s1687_s2 + $0x18] sm:$0xff] }
 0x16c   : > { %v513_v21 = vmul.f32 0.70710677, %v492_v16  ;;  %v495_v22 = vpop.f32.mrb[6].mxu0  ;;  %v505_v55 = vmul.f32 0.5, %v492_v16 }
 0x16d   : > { %1179 = verf.f32 %v512_v17  ;;  %v496_v23 = vadd.f32 %v495_v22, %v396_v20  ;;  %v497_v24 = vpop.f32.mrb[7].mxu0  ;;  %v546_v17 = vpop.permute.xlu1 %545 }
 0x16e   : > { %1181 = verf.f32 %v513_v21  ;;  %v498_v25 = vadd.f32 %v497_v24, %v396_v20 }
 0x16f   : > { %v1172_v26 = vpop.eup %1171  ;;  %v514_v27 = vmul.f32 0.70710677, %v496_v23  ;;  %v506_v40 = vmul.f32 0.5, %v496_v23 }
 0x170   : > { %v1174_v28 = vpop.eup %1173  ;;  %v515_v29 = vmul.f32 0.70710677, %v498_v25  ;;  %v524_v30 = vadd.f32 1.0, %v1172_v26  ;;  %v507_v56 = vmul.f32 0.5, %v498_v25 }
 0x171   : > { %1183 = verf.f32 %v514_v27  ;;  %v525_v32 = vadd.f32 1.0, %v1174_v28  ;;  %v550_v28 = vpop.permute.xlu1 %549 }
 0x172   : > { %1185 = verf.f32 %v515_v29  ;;  %v532_v48 = vmul.f32 %v524_v30, %v500_v42  ;;  %v554_v42 = vpop.permute.xlu0 %553 }
 0x173   : > { %v1176_v31 = vpop.eup %1175  ;;  %v533_v51 = vmul.f32 %v525_v32, %v501_v45 }
 0x174   : > { %v1178_v33 = vpop.eup %1177  ;;  %v526_v44 = vadd.f32 1.0, %v1176_v31 }
 0x175   : > { %v527_v47 = vadd.f32 1.0, %v1178_v33 }
 0x176   : > { %v534_v49 = vmul.f32 %v526_v44, %v502_v43 }
 0x177   : > { %v1180_v50 = vpop.eup %1179  ;;  %v535_v52 = vmul.f32 %v527_v47, %v503_v46 }
 0x178   : > { %v1182_v53 = vpop.eup %1181  ;;  %v1088_v54 = vpack.c.bf16 %v534_v49, %v532_v48  ;;  %v528_v35 = vadd.f32 1.0, %v1180_v50  ;;  %v1307_v49 = vmov 0.0|0.0  }
 0x179   : > { %v1086_v34 = vpack.c.bf16 %v535_v52, %v533_v51  ;;  %v529_v37 = vadd.f32 1.0, %v1182_v53  ;;  %1094 = vmatprep.subr.bf16.mxu0 %v1307_v49 }
 0x17a   : > { %v536_v58 = vmul.f32 %v528_v35, %v504_v39  ;;  %v279_v39 = vld [vmem:[%s1690_s5] sm:$0xff] }
 0x17b   : > { %v1184_v36 = vpop.eup %1183  ;;  %1087 = vmatprep.subr.bf16.mxu1 %v1086_v34  ;;  %v537_v60 = vmul.f32 %v529_v37, %v505_v55 }
 0x17c   : > { %v1186_v38 = vpop.eup %1185  ;;  %v530_v41 = vadd.f32 1.0, %v1184_v36  ;;  %1089 = vmatpush1.bf16.msra.mxu1 %v1088_v54 }
 0x17d   : > { %v531_v57 = vadd.f32 1.0, %v1186_v38 }
 0x17e   : > { %v538_v59 = vmul.f32 %v530_v41, %v506_v40 }
 0x17f   : > { %v539_v61 = vmul.f32 %v531_v57, %v507_v56 }
 0x180   : > { %v1092_v62 = vpack.c.bf16 %v538_v59, %v536_v58  ;;  %v280_v58 = vld [vmem:[%s1690_s5 + $0x8] sm:$0xff] }
 0x181   : > { %v1090_v63 = vpack.c.bf16 %v539_v61, %v537_v60 }
 0x183   : > { %1091 = vmatprep.subr.bf16.mxu1 %v1090_v63 }
 0x184   : > { %1093 = vmatpush1.bf16.msra.mxu1 %v1092_v62 }
 0x187   : > { %1029 = vmatmul.mubr.msk.f32.vlgmr.msra.gmra.mrb[0].mxu1 %vm398_vm4, %v274_v5 }
 0x188   : > { %638 = vmatprep.mubr.f32.mxu1 %v1304_v0 }
 0x18b   : > { %1030 = vmatmul.mubr.msk.f32.gmra.mrb[2].mxu1 %vm398_vm4, %v275_v10 }
 0x18c   : > { %644 = vmatprep.mubr.f32.mxu1 %v1304_v0 }
 0x18f   : > { %1031 = vmatmul.mubr.msk.f32.gmra.mrb[4].mxu1 %vm398_vm4, %v276_v11 }
 0x190   : > { %650 = vmatprep.mubr.f32.mxu1 %v1304_v0  ;;  %v278_v0 = vld [vmem:[%s1689_s4] sm:$0xff] }
 0x193   : > { %1032 = vmatmul.mubr.msk.f32.gmra.mrb[6].mxu1 %vm398_vm4, %v277_v1 }
 0x194   : > { %1072 = vmatprep.mubr.msk.f32.mxu1 %vm763_vm6, %v279_v39 }
 0x25a   : > { %v634_v16 = vpop.f32.mrb[0].mxu1 }
 0x25b   : > { %v1567_v20 = vadd.f32 %v634_v16, %v542_v13  ;;  %v636_v21 = vpop.f32.mrb[1].mxu1 }
 0x25c   : > { %v1569_v22 = vadd.f32 %v636_v21, %v542_v13 }
 0x25e   : > { %v640_v23 = vpop.f32.mrb[2].mxu1  ;;  %v657_v24 = vadd.f32 %v1569_v22, %v1567_v20 }
 0x25f   : > { %v1573_v25 = vadd.f32 %v640_v23, %v546_v17  ;;  %v642_v26 = vpop.f32.mrb[3].mxu1 }
 0x260   : > { %v1575_v27 = vadd.f32 %v642_v26, %v546_v17  ;;  %658 = vadd.xlane.f32.xlu1 %v657_v24 }
 0x262   : > { %v646_v29 = vpop.f32.mrb[4].mxu1  ;;  %v660_v30 = vadd.f32 %v1575_v27, %v1573_v25 }
 0x263   : > { %v1579_v31 = vadd.f32 %v646_v29, %v550_v28  ;;  %v648_v32 = vpop.f32.mrb[5].mxu1 }
 0x264   : > { %v1581_v33 = vadd.f32 %v648_v32, %v550_v28  ;;  %661 = vadd.xlane.f32.xlu0 %v660_v30 }
 0x266   : > { %v652_v43 = vpop.f32.mrb[6].mxu1  ;;  %v663_v44 = vadd.f32 %v1581_v33, %v1579_v31 }
 0x267   : > { %v1585_v45 = vadd.f32 %v652_v43, %v554_v42  ;;  %v654_v46 = vpop.f32.mrb[7].mxu1 }
 0x268   : > { %v1587_v47 = vadd.f32 %v654_v46, %v554_v42  ;;  %664 = vadd.xlane.f32.xlu0 %v663_v44 }
 0x26a   : > { %v666_v48 = vadd.f32 %v1587_v47, %v1585_v45 }
 0x26c   : > { %667 = vadd.xlane.f32.xlu1 %v666_v48 }
 0x27d   : > { %751 = vrot.lane.b32.xlu1 %v1492_v14, %s1310_s19 }
 0x27e   : > { %674 = vrot.lane.b32.xlu0 %v1492_v14, %s1309_s12  ;;  %v281_v14 = vld [vmem:[%s1690_s5 + $0x10] sm:$0xff]  ;;  %s269_s12 = scalar_lea.vmem [#allocation5], %s1023_s7  ;;  %s1635_s7 = scalar_lea.hbm %s1691_s6, %s1048_s28 }
 0x27f   : > { %s943_s13 = sshll.u32 %s269_s12, 4  ;;  %s1637_s13 = int_to_ptr.vmem [resolvable:$true] %s943_s13 }
 0x280   : > { %s1233_s18 = scalar_lea.vmem %s1637_s13, 1024 }
 0x281   : > { %753 = vrot.lane.b32.xlu1 %v1506_v18, %s1310_s19  ;;  %p1234_p6 = scmp.ne.s32.totalorder %s1637_s13, %s1233_s18 }
 0x282   : > { %755 = vrot.lane.b32.xlu0 %v1497_v15, %s1310_s19  ;;  %v282_v15 = vld [vmem:[%s1690_s5 + $0x18] sm:$0xff] }
 0x283   : > { %p1235_p12 = pnand %p1234_p6, %p1698_p11 }
 0x285   : > { %757 = vrot.lane.b32.xlu1 %v1511_v19, %s1310_s19  ;;  %p1236_p13 = pneg %p1235_p12  ;;  %s1311_s19 = smov [#allocation5]  }
 0x286   : > { %s1237_s20 = sshll.u32 %s1311_s19, 4  ;;  %s1238_s20 = int_to_ptr.vmem [resolvable:$false] %s1237_s20 }
 0x287   : > { %s1239_s11 = scalar_lea.vmem %s1238_s20, 2048  ;;  %p1240_p8 = scmp.lt.s32.totalorder %s1637_s13, %s1238_s20 }
 0x288   : > { %p1241_p10 = scmp.lt.s32.totalorder %s1239_s11, %s1233_s18 }
 0x28a   : > { %p1242_p0 = por %p1241_p10, %p1240_p8 }
 0x28c   : > { %p1243_p2 = pnand %p1242_p0, %p1236_p13 }
 0x2ed   : > { %v659_v50 = vpop.xlane.xlu1 %658 }
 0x2ee   : > { %v670_v52 = vmul.f32 0.00390625, %v659_v50 }
 0x2f1   : > { %v662_v51 = vpop.xlane.xlu0 %661 }
 0x2f2   : > { %v671_v53 = vmul.f32 0.00390625, %v662_v51 }
 0x2f4   : > { %v1095_v54 = vpack.c.bf16 %v671_v53, %v670_v52 }
 0x2f5   : > { %v665_v34 = vpop.xlane.xlu0 %664 }
 0x2f6   : > { %1096 = vmatpush3.bf16.msra.mxu0 %v1095_v54  ;;  %v672_v36 = vmul.f32 0.00390625, %v665_v34 }
 0x2f7   : > { %1097 = vmatprep.subr.bf16.mxu0 %v1307_v49 }
 0x2f9   : > { %v668_v35 = vpop.xlane.xlu1 %667  ;;  %v675_v40 = vpop.permute.xlu0 %674 }
 0x2fa   : > { %v673_v37 = vmul.f32 0.00390625, %v668_v35 }
 0x2fc   : > { %v1098_v38 = vpack.c.bf16 %v673_v37, %v672_v36 }
 0x2fd   : > { %v752_v18 = vpop.permute.xlu1 %751  ;;  %v756_v10 = vpop.permute.xlu0 %755 }
 0x2fe   : > { %1099 = vmatpush3.bf16.msra.mxu0 %v1098_v38 }
 0x301   : > { %1068 = vmatmul.mubr.msk.f32.vlgmr.msra.gmra.mrb[8].mxu0 %vm398_vm4, %v278_v0  ;;  %v754_v19 = vpop.permute.xlu1 %753 }
 0x305   : > { %v758_v63 = vpop.permute.xlu1 %757 }
 0x3d4   : > { %v746_v41 = vpop.f32.mrb[8].mxu0 }
 0x3d5   : > { %v747_v55 = vadd.f32 %v746_v41, %v675_v40  ;;  %v1069_v56 = vpop.f32.mrb[9].mxu0 }
 0x3d7   : > { %v750_v57 = vmax.f32 %v747_v55, 0.0 }
 0x3d9   : > { %1070 = vmatprep.subr.mxu1 %v750_v57 }
 0x3da   : > { %1071 = vmatpush3.msra.mxu1 %v750_v57 }
 0x3db   : > { %1073 = vmatmul.mubr.msk.f32.vlgmr.msra.gmra.mrb[8].mxu1 %vm763_vm6, %v280_v58 }
 0x3dc   : > { %1075 = vmatprep.mubr.msk.f32.mxu1 %vm763_vm6, %v281_v14 }
 0x3df   : > { %1076 = vmatmul.mubr.msk.f32.gmra.mrb[10].mxu1 %vm763_vm6, %v282_v15 }
 0x4ae   : > { %v1074_v59 = vpop.f32.mrb[8].mxu1 }
 0x4af   : > { %v848_v60 = vadd.f32 %v1074_v59, %v754_v19  ;;  %v842_v61 = vpop.f32.mrb[9].mxu1 }
 0x4b0   : > { %v843_v62 = vadd.f32 %v842_v61, %v752_v18 }
 0x4b1   : > { %v1039_v5 = vmul.f32 -1.442695, %v848_v60 }
 0x4b2   : > { %v1038_v11 = vmul.f32 -1.442695, %v843_v62  ;;  %v1077_v1 = vpop.f32.mrb[10].mxu1 }
 0x4b3   : > { %1187 = vpow2.f32 %v1039_v5  ;;  %v852_v13 = vpop.f32.mrb[11].mxu1  ;;  %v858_v16 = vadd.f32 %v1077_v1, %v758_v63 }
 0x4b4   : > { %1189 = vpow2.f32 %v1038_v11  ;;  %v853_v17 = vadd.f32 %v852_v13, %v756_v10 }
 0x4b5   : > { %v1041_v21 = vmul.f32 -1.442695, %v858_v16 }
 0x4b6   : > { %v1040_v23 = vmul.f32 -1.442695, %v853_v17 }
 0x4b7   : > { %1191 = vpow2.f32 %v1041_v21 }
 0x4b8   : > { %1193 = vpow2.f32 %v1040_v23 }
 0x4bd   : > { %v1188_v24 = vpop.eup %1187 }
 0x4be   : > { %v1190_v26 = vpop.eup %1189  ;;  %v874_v28 = vadd.f32 1.0, %v1188_v24 }
 0x4bf   : > { %v873_v29 = vadd.f32 1.0, %v1190_v26 }
 0x4c0   : > { %1195 = vrcp.f32 %v874_v28 }
 0x4c1   : > { %v1192_v30 = vpop.eup %1191  ;;  %1197 = vrcp.f32 %v873_v29 }
 0x4c2   : > { %v1194_v32 = vpop.eup %1193  ;;  %v876_v42 = vadd.f32 1.0, %v1192_v30 }
 0x4c3   : > { %v875_v43 = vadd.f32 1.0, %v1194_v32 }
 0x4c4   : > { %1199 = vrcp.f32 %v876_v42 }
 0x4c5   : > { %1201 = vrcp.f32 %v875_v43 }
 0x4ca   : > { %v1196_v44 = vpop.eup %1195 }
 0x4cb   : > { %v1198_v46 = vpop.eup %1197  ;;  %892 = vperm.xlu1 %1161, %v1196_v44  }
 0x4cc   : > { %887 = vperm.xlu0 %1162, %v1198_v46  }
 0x4ce   : > { %v1200_v48 = vpop.eup %1199 }
 0x4cf   : > { %v1202_v49 = vpop.eup %1201 }
 0x4d0   : > { %897 = vperm.xlu1 %1161, %v1202_v49   ;;  %902 = vperm.xlu0 %1162, %v1200_v48  }
 0x54a   : > { %v893_v50 = vpop.permute.xlu1 %892 }
 0x54b   : > { %v907_v51 = vmul.f32 %v893_v50, %v1573_v25  ;;  %v908_v52 = vmul.f32 %v893_v50, %v1575_v27  ;;  %v888_v53 = vpop.permute.xlu0 %887 }
 0x54c   : > { %v905_v54 = vmul.f32 %v888_v53, %v1567_v20  ;;  %v906_v34 = vmul.f32 %v888_v53, %v1569_v22 }
 0x54d   : > { %v915_v35 = vadd.f32 %v907_v51, %v1477_v7  ;;  %v916_v36 = vadd.f32 %v908_v52, %v1469_v3 }
 0x54e   : > { %v913_v37 = vadd.f32 %v905_v54, %v1475_v6  ;;  %v914_v38 = vadd.f32 %v906_v34, %v1467_v2 }
 0x54f   : > { %923 = vst [vmem:[%s269_s12 + $0x10] sm:$0xff] %v915_v35  ;;  %924 = vst [vmem:[%s269_s12 + $0x18] sm:$0xff] %v916_v36  ;;  %v903_v25 = vpop.permute.xlu0 %902  ;;  %v898_v27 = vpop.permute.xlu1 %897 }
 0x550   : > { %921 = vst [vmem:[%s269_s12] sm:$0xff] %v913_v37  ;;  %922 = vst [vmem:[%s269_s12 + $0x8] sm:$0xff] %v914_v38  ;;  %v911_v20 = vmul.f32 %v903_v25, %v1585_v45  ;;  %v912_v7 = vmul.f32 %v903_v25, %v1587_v47  ;;  %v909_v3 = vmul.f32 %v898_v27, %v1579_v31 }
 0x551   : > { %v910_v2 = vmul.f32 %v898_v27, %v1581_v33 }
 0x552   : > { %v919_v6 = vadd.f32 %v911_v20, %v1486_v12  ;;  %v920_v22 = vadd.f32 %v912_v7, %v1479_v8  ;;  %v917_v45 = vadd.f32 %v909_v3, %v1481_v9 }
 0x553   : > { %v918_v31 = vadd.f32 %v910_v2, %v1471_v4 }
 0x554   : > { %927 = vst [vmem:[%s269_s12 + $0x30] sm:$0xff] %v919_v6  ;;  %928 = vst [vmem:[%s269_s12 + $0x38] sm:$0xff] %v920_v22 }
 0x555   : > { %925 = vst [vmem:[%s269_s12 + $0x20] sm:$0xff] %v917_v45  ;;  %926 = vst [vmem:[%s269_s12 + $0x28] sm:$0xff] %v918_v31 }
 0x556   : > { %1246 = shalt.err (!%p1243_p2)
}
 0x557   : > { %s1247_s14 = scalar_lea.hbm %s1635_s7, 1024  ;;  %s1251_s26 = scalar_lea.hbm %s1691_s6, 2048 }
 0x558   : > { %p1248_p4 = scmp.ne.s32.totalorder %s1635_s7, %s1247_s14  ;;  %p1252_p9 = scmp.lt.u32.totalorder %s1635_s7, %s1691_s6 }
 0x559   : > { %p1253_p1 = scmp.lt.u32.totalorder %s1251_s26, %s1247_s14  ;;  %p1255_p6 = scmp.lt.u32.totalorder %s1247_s14, %s1635_s7 }
 0x55a   : > { %p1249_p5 = pnand %p1248_p4, %p1698_p11 }
 0x55b   : > { %p1254_p3 = por %p1253_p1, %p1252_p9 }
 0x55c   : > { %p1250_p7 = pneg %p1249_p5 }
 0x55d   : > { %p1256_p12 = por %p1255_p6, %p1254_p3 }
 0x55f   : > { %p1257_p13 = pnand %p1256_p12, %p1250_p7 }
 0x561   : > { %1260 = shalt.err (!%p1257_p13)
}
 0x562   : > { %s1312_s25 = smov 256   ;;  %s1313_s8 = smov 16  }
 0x563   : > { %1102 = dma.vmem_to_hbm [thread:$0]  (%p1698_p11), %s1637_s13, 1024, %s1635_s7, %s930_s16, %s1312_s25, %s1312_s25, %s1313_s8  }
 0x564 PF: > { %s958_s18 = sand.u32 1, %s1287_s21   ;;  %p1699_p8 = scmp.ne.s32.totalorder %s1696_s10, 0 }
 0x565   : > { %p1700_p10 = scmp.ge.s32.totalorder %s1299_s24, 2  ;;  %s959_s19 = scalar_lea.sflag [#allocation4], %s958_s18 }
 0x567   : > { %p1109_p0 = pnand %p1700_p10, %p1699_p8 }
 0x569   : > { %1282 = dma.done.wait (!%p1109_p0), %s959_s19, 1024  }
 0x56a   : > { %1284 = vsyncadd (!%p1109_p0), %s959_s19, 4294966272  ;;  %p19_p2 = scmp.ge.s32.totalorder %s1374_s27, 4   ;;  %s1701_s21 = smov %s1291_s22 }
 0x56b   : > { %s1702_s22 = smov %s1295_s23  ;;  %s1703_s23 = smov %s1386_s30 }
 0x56c   : > { %s1704_s24 = smov %s1374_s27  ;;  %21 = sbr.rel (!%p19_p2) target bundleno = 5 (0x5), region = 89 }
 0x573   :  { %964 = vsyncpa [#allocation3], 1 }
 0x574   :  { %966 = vsyncpa [#allocation3 + $0x1], 1 }
 0x575   :  { %967 = vsyncpa [#allocation4], 1 }
 0x576   :  { %969 = vsyncpa [#allocation4 + $0x1], 1 }

</bundles_post_ra>
